<compile_context>
chip_gen: v5e
topology: v5e:2x2
jax: 0.10.0
libtpu: 0.0.40
codegen_flags: <defaults>
</compile_context>

<pallas_src>
import jax
import jax.numpy as jnp
from jax.experimental import pallas as pl
from jax.experimental.pallas import tpu as pltpu


def concat_attention_kernel(enc_ref, dec_ref, enc_mask_ref,
                            w_enc_t_ref, w_dec_t_ref, v_ref,
                            attn_ref, dist_ref):
    TB, S, D = enc_ref.shape
    Hm = v_ref.shape[1]

    enc = enc_ref[...]                                                # (TB, S, D) bf16

    # score_{b,s} = v_a . tanh( W_a @ [enc_{b,s}; dec_b] )
    # concat([enc, dec]) @ W_a.T == enc @ W_enc.T + dec @ W_dec.T; weight splits
    # arrive pre-transposed so both matmuls feed the MXU directly (bf16 in, f32 acc).
    proj_enc = jnp.dot(enc.reshape(TB * S, D), w_enc_t_ref[...],
                       preferred_element_type=jnp.float32)            # (TB*S, Hm) f32
    proj_dec = jnp.dot(dec_ref[...], w_dec_t_ref[...],
                       preferred_element_type=jnp.float32)            # (TB, Hm)   f32
    t = jnp.tanh(proj_enc.reshape(TB, S, Hm) + proj_dec[:, None, :])  # (TB, S, Hm) f32

    # v_a reduction on the VPU + lane reduce: an (..., Hm) @ (Hm, 1) MXU matmul
    # would waste the whole systolic array for a 1-lane result.
    scores = jnp.sum(t * v_ref[...], axis=-1)                         # (TB, S) f32

    # Masked, numerically-safe softmax: finite fill keeps fully-masked rows
    # finite (uniform) instead of NaN; exp(-1e30 - m) underflows to exactly 0.
    scores = jnp.where(enc_mask_ref[...] > 0, jnp.float32(-1e30), scores)
    m = jnp.max(scores, axis=-1, keepdims=True)
    p = jnp.exp(scores - m)
    dist = p / jnp.sum(p, axis=-1, keepdims=True)                     # (TB, S) f32
    dist_ref[...] = dist

    # attention_b = sum_s dist_{b,s} * enc_{b,s}: batched MXU contraction over S
    # (avoids a (TB, S, D) f32 broadcast temporary + cross-sublane reduce).
    attn = jnp.einsum('bqs,bsd->bqd',
                      dist[:, None, :].astype(enc.dtype), enc,
                      preferred_element_type=jnp.float32)             # (TB, 1, D) f32
    attn_ref[...] = attn[:, 0, :]


def _default_vmem_limit_bytes():
    """Most of the chip's VMEM (v7x: ~48 MiB, v5e/v6e: ~96 MiB) with headroom."""
    try:
        cap = pltpu.get_tpu_info().vmem_capacity_bytes
    except Exception:
        cap = 64 * 1024 * 1024
    return int(min(cap * 3 // 4, 100 * 1024 * 1024))


def _pick_batch_tile(B, S, D, Hm, budget_bytes):
    """Largest batch tile whose double-buffered streams + f32 intermediates fit."""
    per_row = 2 * (S * D * 2      # enc tile (bf16), double-buffered
                   + D * 2        # dec tile (bf16)
                   + S * 4        # encoder mask (int32)
                   + D * 4        # attention out (f32)
                   + S * 4)       # distribution out (f32)
    per_row += 2 * S * Hm * 4     # proj / tanh intermediates (f32)
    per_row += 2 * S * 4          # scores / softmax intermediates (f32)
    tb = int(max(1, budget_bytes // max(per_row, 1)))
    if tb >= B:
        return B
    # Keep the second-to-last dim of the 2-D blocks (dec/mask/outputs) 8-aligned.
    return max(8, (tb // 8) * 8)


def concat_attention(encoder_hidden, encoder_mask, decoder_hidden, decoder_mask,
                     W_a, v_a, *, batch_tile=None, vmem_limit_bytes=None):
    """ConcatAttention forward.  Returns (attention (B, D), distribution (B, S))."""
    B, S, D = encoder_hidden.shape
    Hm = W_a.shape[0]
    assert W_a.shape == (Hm, 4 * Hm) and D == 2 * Hm, (
        "concat width must equal 4 * hidden_dim (encoder states are 2 * hidden_dim wide)")

    # Split + transpose the weight once on the host: the column split at D is not
    # on a 128-lane boundary, so doing it in-kernel forces masked copies and a
    # per-step transpose.  MXU operands in bf16; v_a stays f32 (VPU use only).
    w_enc_t = W_a[:, :D].T.astype(jnp.bfloat16)          # (D, Hm)
    w_dec_t = W_a[:, D:].T.astype(jnp.bfloat16)          # (D, Hm)
    v2 = v_a.reshape(1, Hm).astype(jnp.float32)

    enc = encoder_hidden.astype(jnp.bfloat16)            # dominant HBM traffic -> bf16
    dec = decoder_hidden.astype(jnp.bfloat16)
    enc_mask = encoder_mask.astype(jnp.int32)            # (B, S)

    if vmem_limit_bytes is None:
        vmem_limit_bytes = _default_vmem_limit_bytes()
    if batch_tile is None:
        batch_tile = _pick_batch_tile(B, S, D, Hm, vmem_limit_bytes // 2)
    TB = int(min(batch_tile, B))
    grid = (pl.cdiv(B, TB),)

    attn, dist = pl.pallas_call(
        concat_attention_kernel,
        out_shape=(jax.ShapeDtypeStruct((B, D), jnp.float32),
                   jax.ShapeDtypeStruct((B, S), jnp.float32)),
        grid=grid,
        in_specs=[
            pl.BlockSpec((TB, S, D), lambda b: (b, 0, 0)),   # encoder states (batch-tiled)
            pl.BlockSpec((TB, D),    lambda b: (b, 0)),      # decoder state
            pl.BlockSpec((TB, S),    lambda b: (b, 0)),      # encoder <PAD> mask
            pl.BlockSpec((D, Hm),    lambda b: (0, 0)),      # W_enc^T (resident)
            pl.BlockSpec((D, Hm),    lambda b: (0, 0)),      # W_dec^T (resident)
            pl.BlockSpec((1, Hm),    lambda b: (0, 0)),      # v_a      (resident)
        ],
        out_specs=(
            pl.BlockSpec((TB, D), lambda b: (b, 0)),         # attention
            pl.BlockSpec((TB, S), lambda b: (b, 0)),         # distribution
        ),
        compiler_params=pltpu.CompilerParams(
            dimension_semantics=("parallel",),
            vmem_limit_bytes=int(vmem_limit_bytes)),
    )(enc, dec, enc_mask, w_enc_t, w_dec_t, v2)

    # Zero rows where the decoder step itself is <PAD>.  Done on the tiny (B, D)
    # output in the wrapper so the lane-padded (B, 1) mask never enters the
    # kernel's DMA pipeline.
    attn = jnp.where(decoder_mask.reshape(B, 1), 0.0, attn)
    return attn, dist


if __name__ == "__main__":
    key = jax.random.PRNGKey(0)
    k1, k2, k3, k4 = jax.random.split(key, 4)

    B, S, Hm = 2, 8, 16          # module hidden_dim = 16
    D = 2 * Hm                   # actual encoder/decoder state width = 32

    # deterministic parameter init (matches nn.init.normal_: std normal)
    W_a = jax.random.normal(k1, (Hm, 4 * Hm), jnp.float32)
    v_a = jax.random.normal(k2, (Hm,), jnp.float32)

    # inputs: zero-out <PAD> tails so masks == (hidden == 0).all(-1), as the module asserts
    enc = jax.random.normal(k3, (B, S, D), jnp.float32)
    valid_lens = jnp.array([6, 5])
    pad = jnp.arange(S)[None, :] >= valid_lens[:, None]       # (B, S) True for <PAD>
    enc = jnp.where(pad[:, :, None], 0.0, enc)
    dec = jax.random.normal(k4, (B, D), jnp.float32)

    enc_mask = jnp.all(enc == 0.0, axis=-1)                   # (B, S) bool
    dec_mask = jnp.all(dec == 0.0, axis=-1)                   # (B,)   bool

    attn, dist = concat_attention(enc, enc_mask, dec, dec_mask, W_a, v_a)
    jax.block_until_ready((attn, dist))

    # pure-JAX f32 reference on bf16-rounded inputs (the kernel feeds the MXU in bf16)
    enc_b = enc.astype(jnp.bfloat16).astype(jnp.float32)
    dec_b = dec.astype(jnp.bfloat16).astype(jnp.float32)
    W_b = W_a.astype(jnp.bfloat16).astype(jnp.float32)
    cat = jnp.concatenate([enc_b, jnp.broadcast_to(dec_b[:, None, :], (B, S, D))], -1)
    scores = jnp.einsum('bsh,h->bs',
                        jnp.tanh(jnp.einsum('bsk,hk->bsh', cat, W_b)), v_a)
    scores = jnp.where(enc_mask, -jnp.inf, scores)
    ref_dist = jax.nn.softmax(scores, axis=1)
    ref_attn = jnp.sum(enc_b * ref_dist[:, :, None], axis=1)
    ref_attn = jnp.where(dec_mask[:, None], 0.0, ref_attn)

    assert attn.shape == (B, D) and dist.shape == (B, S)
    assert jnp.allclose(dist, ref_dist, atol=1e-3), "distribution mismatch"
    assert jnp.allclose(attn, ref_attn, atol=2e-2, rtol=2e-2), "attention mismatch"
    print("KERNEL_OK")
</pallas_src>

<mosaic_0001>
module attributes {stable_mosaic.version = 11 : i64} {
  func.func @concat_attention_kernel(%arg0: i32, %arg1: memref<2x8x32xbf16, #tpu.memory_space<vmem>>, %arg2: memref<2x32xbf16, #tpu.memory_space<vmem>>, %arg3: memref<2x8xi32, #tpu.memory_space<vmem>>, %arg4: memref<32x16xbf16, #tpu.memory_space<vmem>>, %arg5: memref<32x16xbf16, #tpu.memory_space<vmem>>, %arg6: memref<1x16xf32, #tpu.memory_space<vmem>>, %arg7: memref<2x32xf32, #tpu.memory_space<vmem>>, %arg8: memref<2x8xf32, #tpu.memory_space<vmem>>) attributes {dimension_semantics = [#tpu.dimension_semantics<parallel>], iteration_bounds = array<i64: 1>, scalar_prefetch = 0 : i64, scratch_operands = 0 : i64, tpu.core_type = #tpu.core_type<tc>, window_params = [{transform_indices = @transform_0, window_bounds = array<i64: 2, 8, 32>}, {transform_indices = @transform_1, window_bounds = array<i64: 2, 32>}, {transform_indices = @transform_2, window_bounds = array<i64: 2, 8>}, {pipeline_mode = #tpu.pipeline_mode<synchronous>, transform_indices = @transform_3, window_bounds = array<i64: 32, 16>}, {pipeline_mode = #tpu.pipeline_mode<synchronous>, transform_indices = @transform_4, window_bounds = array<i64: 32, 16>}, {pipeline_mode = #tpu.pipeline_mode<synchronous>, transform_indices = @transform_5, window_bounds = array<i64: 1, 16>}, {transform_indices = @transform_6, window_bounds = array<i64: 2, 32>}, {transform_indices = @transform_7, window_bounds = array<i64: 2, 8>}]} {
    %c0 = arith.constant 0 : index
    %c0_0 = arith.constant 0 : index
    %c0_1 = arith.constant 0 : index
    %0 = vector.load %arg1[%c0, %c0_0, %c0_1] : memref<2x8x32xbf16, #tpu.memory_space<vmem>>, vector<2x8x32xbf16>
    %1 = vector.shape_cast %0 : vector<2x8x32xbf16> to vector<16x32xbf16>
    %c0_2 = arith.constant 0 : index
    %c0_3 = arith.constant 0 : index
    %2 = vector.load %arg4[%c0_2, %c0_3] : memref<32x16xbf16, #tpu.memory_space<vmem>>, vector<32x16xbf16>
    %cst = arith.constant dense<0.000000e+00> : vector<16x16xf32>
    %3 = tpu.matmul %1, %2, %cst {dimension_numbers = #tpu.dot_dimension_numbers<[1], [0], [0], [1], [0, 0, 1, 1], [], []>} : vector<16x32xbf16>, vector<32x16xbf16>, vector<16x16xf32> -> vector<16x16xf32>
    %c0_4 = arith.constant 0 : index
    %c0_5 = arith.constant 0 : index
    %4 = vector.load %arg2[%c0_4, %c0_5] : memref<2x32xbf16, #tpu.memory_space<vmem>>, vector<2x32xbf16>
    %c0_6 = arith.constant 0 : index
    %c0_7 = arith.constant 0 : index
    %5 = vector.load %arg5[%c0_6, %c0_7] : memref<32x16xbf16, #tpu.memory_space<vmem>>, vector<32x16xbf16>
    %cst_8 = arith.constant dense<0.000000e+00> : vector<2x16xf32>
    %6 = tpu.matmul %4, %5, %cst_8 {dimension_numbers = #tpu.dot_dimension_numbers<[1], [0], [0], [1], [0, 0, 1, 1], [], []>} : vector<2x32xbf16>, vector<32x16xbf16>, vector<2x16xf32> -> vector<2x16xf32>
    %7 = vector.shape_cast %3 : vector<16x16xf32> to vector<2x8x16xf32>
    %8 = vector.shape_cast %6 : vector<2x16xf32> to vector<2x1x16xf32>
    %9 = vector.broadcast %8 : vector<2x1x16xf32> to vector<2x8x16xf32>
    %10 = arith.addf %7, %9 : vector<2x8x16xf32>
    %11 = math.tanh %10 : vector<2x8x16xf32>
    %c0_9 = arith.constant 0 : index
    %c0_10 = arith.constant 0 : index
    %12 = vector.load %arg6[%c0_9, %c0_10] : memref<1x16xf32, #tpu.memory_space<vmem>>, vector<1x16xf32>
    %13 = vector.shape_cast %12 : vector<1x16xf32> to vector<1x1x16xf32>
    %14 = vector.broadcast %13 : vector<1x1x16xf32> to vector<2x8x16xf32>
    %15 = arith.mulf %11, %14 : vector<2x8x16xf32>
    %cst_11 = arith.constant dense<0.000000e+00> : vector<2x8xf32>
    %16 = vector.multi_reduction <add>, %15, %cst_11 [2] : vector<2x8x16xf32> to vector<2x8xf32>
    %c0_12 = arith.constant 0 : index
    %c0_13 = arith.constant 0 : index
    %17 = vector.load %arg3[%c0_12, %c0_13] : memref<2x8xi32, #tpu.memory_space<vmem>>, vector<2x8xi32>
    %c0_i32 = arith.constant 0 : i32
    %18 = vector.broadcast %c0_i32 : i32 to vector<2x8xi32>
    %19 = arith.cmpi sgt, %17, %18 : vector<2x8xi32>
    %cst_14 = arith.constant -1.000000e+30 : f32
    %20 = vector.broadcast %cst_14 : f32 to vector<2x8xf32>
    %21 = arith.select %19, %20, %16 : vector<2x8xi1>, vector<2x8xf32>
    %cst_15 = arith.constant dense<0xFF800000> : vector<2xf32>
    %22 = vector.multi_reduction <maximumf>, %21, %cst_15 [1] : vector<2x8xf32> to vector<2xf32>
    %23 = vector.shape_cast %22 : vector<2xf32> to vector<2x1xf32>
    %24 = vector.broadcast %23 : vector<2x1xf32> to vector<2x8xf32>
    %25 = arith.subf %21, %24 : vector<2x8xf32>
    %26 = math.exp %25 : vector<2x8xf32>
    %cst_16 = arith.constant dense<0.000000e+00> : vector<2xf32>
    %27 = vector.multi_reduction <add>, %26, %cst_16 [1] : vector<2x8xf32> to vector<2xf32>
    %28 = vector.shape_cast %27 : vector<2xf32> to vector<2x1xf32>
    %29 = vector.broadcast %28 : vector<2x1xf32> to vector<2x8xf32>
    %30 = arith.divf %26, %29 : vector<2x8xf32>
    %c0_17 = arith.constant 0 : index
    %c0_18 = arith.constant 0 : index
    %31 = vector.load %arg8[%c0_17, %c0_18] : memref<2x8xf32, #tpu.memory_space<vmem>>, vector<2x8xf32>
    tpu.vector_store %arg8[%c0_17, %c0_18], %30 {strides = array<i32>} : memref<2x8xf32, #tpu.memory_space<vmem>>, vector<2x8xf32>,
    %32 = vector.shape_cast %30 : vector<2x8xf32> to vector<2x1x8xf32>
    %33 = arith.truncf %32 : vector<2x1x8xf32> to vector<2x1x8xbf16>
    "tpu.trace_start"() <{level = 10 : i32, message = "bqs,bsd->bqd"}> : () -> ()
    %cst_19 = arith.constant dense<0.000000e+00> : vector<2x1x32xf32>
    %34 = tpu.matmul %33, %0, %cst_19 {dimension_numbers = #tpu.dot_dimension_numbers<[2], [1], [1], [2], [0, 0, 0, 1, 1, 2], [0], [0]>} : vector<2x1x8xbf16>, vector<2x8x32xbf16>, vector<2x1x32xf32> -> vector<2x1x32xf32>
    "tpu.trace_stop"() : () -> ()
    %35 = vector.shape_cast %34 : vector<2x1x32xf32> to vector<2x32xf32>
    %c0_20 = arith.constant 0 : index
    %c0_21 = arith.constant 0 : index
    %36 = vector.load %arg7[%c0_20, %c0_21] : memref<2x32xf32, #tpu.memory_space<vmem>>, vector<2x32xf32>
    tpu.vector_store %arg7[%c0_20, %c0_21], %35 {strides = array<i32>} : memref<2x32xf32, #tpu.memory_space<vmem>>, vector<2x32xf32>,
    return
  }
  func.func @transform_0(%arg0: i32) -> (i32, i32, i32) {
    %c0_i32 = arith.constant 0 : i32
    %c0_i32_0 = arith.constant 0 : i32
    %c0_i32_1 = arith.constant 0 : i32
    return %arg0, %c0_i32, %c0_i32_0 : i32, i32, i32
  }
  func.func @transform_1(%arg0: i32) -> (i32, i32) {
    %c0_i32 = arith.constant 0 : i32
    %c0_i32_0 = arith.constant 0 : i32
    return %arg0, %c0_i32 : i32, i32
  }
  func.func @transform_2(%arg0: i32) -> (i32, i32) {
    %c0_i32 = arith.constant 0 : i32
    %c0_i32_0 = arith.constant 0 : i32
    return %arg0, %c0_i32 : i32, i32
  }
  func.func @transform_3(%arg0: i32) -> (i32, i32) {
    %c0_i32 = arith.constant 0 : i32
    %c0_i32_0 = arith.constant 0 : i32
    %c0_i32_1 = arith.constant 0 : i32
    return %c0_i32, %c0_i32_0 : i32, i32
  }
  func.func @transform_4(%arg0: i32) -> (i32, i32) {
    %c0_i32 = arith.constant 0 : i32
    %c0_i32_0 = arith.constant 0 : i32
    %c0_i32_1 = arith.constant 0 : i32
    return %c0_i32, %c0_i32_0 : i32, i32
  }
  func.func @transform_5(%arg0: i32) -> (i32, i32) {
    %c0_i32 = arith.constant 0 : i32
    %c0_i32_0 = arith.constant 0 : i32
    %c0_i32_1 = arith.constant 0 : i32
    return %c0_i32, %c0_i32_0 : i32, i32
  }
  func.func @transform_6(%arg0: i32) -> (i32, i32) {
    %c0_i32 = arith.constant 0 : i32
    %c0_i32_0 = arith.constant 0 : i32
    return %arg0, %c0_i32 : i32, i32
  }
  func.func @transform_7(%arg0: i32) -> (i32, i32) {
    %c0_i32 = arith.constant 0 : i32
    %c0_i32_0 = arith.constant 0 : i32
    return %arg0, %c0_i32 : i32, i32
  }
}

</mosaic_0001>

<bundles_post_ra>
// kernel: tpu_custom_call.1
= control target key start
LH: loop header
LB: loop body
LE: loop exit
PB: predicated region body
PF: predicated region fallthrough
CT: control target
= control target key end

     0   :  { %13 = vsyncpa [#allocation3], 0  ;;  %s422_s0 = inlined_call_operand.vmem [shape: bf16[2,8,32], index: 0, kind: input, shape index: {}]   ;;  %s423_s1 = inlined_call_operand.vmem [shape: bf16[2,32], index: 1, kind: input, shape index: {}]   ;;  %s424_s2 = inlined_call_operand.vmem [shape: s32[2,8], index: 2, kind: input, shape index: {}]   ;;  %s425_s3 = inlined_call_operand.vmem [shape: bf16[32,16], index: 3, kind: input, shape index: {}]   ;;  %s426_s4 = inlined_call_operand.vmem [shape: bf16[32,16], index: 4, kind: input, shape index: {}]   ;;  %s427_s5 = inlined_call_operand.vmem [shape: f32[1,16], index: 5, kind: input, shape index: {}]   ;;  %s428_s6 = inlined_call_operand.hbm [shape: f32[2,32], index: 6, kind: output, shape index: {0}]   ;;  %s429_s7 = inlined_call_operand.hbm [shape: f32[2,8], index: 7, kind: output, shape index: {1}]  }
   0x1   :  { %v273_v0 = vld [vmem:[%s425_s3 + $0x8] sm:$0xff]  ;;  %v272_v2 = vld [vmem:[%s425_s3] sm:$0xff] }
   0x2   :  { %v275_v1 = vld [vmem:[%s426_s4 + $0x8] sm:$0xff]  ;;  %61 = vmatpush.bf16.msra.mxu0 %v273_v0  ;;  %v274_v3 = vld [vmem:[%s426_s4] sm:$0xff] }
   0x3   :  { %95 = vmatpush.bf16.msra.mxu1 %v275_v1 }
   0x4   :  { %14 = vsyncpa [#allocation5], 0  ;;  %v271_v4 = vld [vmem:[%s422_s0] sm:$0xff]  ;;  %vm51_vm0 = vcmask 261120   ;;  %vm118_vm1 = vcmask 130048   ;;  %v129_v23 = vlaneseq  ;;  %vm133_vm2 = vcmask 1041409  }
   0x5   :  { %v69_v5 = vld [vmem:[%s423_s1] sm:$0x1]  ;;  %vm137_vm4 = vcmask 58368   ;;  %vm172_vm5 = vcmask 1043456   ;;  %v29_v38 = vld [vmem:[%s422_s0 + $0x4] sm:$0xf] }
   0x6   :  { %62 = vmatpush.bf16.msra.mxu0 %v272_v2  ;;  %v278_v14 = vld [vmem:[%s427_s5] ss:$0 sm:$0xff]  ;;  %v130_v24 = vand.u32 127, %v129_v23  ;;  %v193_v40 = vsel %vm172_vm5, %v29_v38, 0  ;;  %vm168_vm10 = vcmask 64512   ;;  %s233_s19 = sshll.u32 %s429_s7, 4  ;;  %s234_s19 = int_to_ptr.hbm [resolvable:$true] %s233_s19 }
   0x7   :  { %96 = vmatpush.bf16.msra.mxu1 %v274_v3  ;;  %v125_v25 = vld [vmem:[%s424_s2] sm:$0x3]  ;;  %202 = vmatpush.bf16.msra.mxu3 %v193_v40  ;;  %s340_s20 = smov [#allocation2]   ;;  %s222_s24 = sshll.u32 %s428_s6, 4  ;;  %vm213_vm11 = vcmask 254976   ;;  %s223_s24 = int_to_ptr.hbm [resolvable:$true] %s222_s24 }
   0x8   :  { %vm126_vm3 = vcmp.gt.s32.totalorder %v125_v25, 0  ;;  %v28_v37 = vld [vmem:[%s422_s0] sm:$0xf]  ;;  %s339_s0 = smov [#allocation4]   ;;  %s220_s21 = sshll.u32 %s340_s20, 4  ;;  %s221_s21 = int_to_ptr.vmem [resolvable:$true] %s220_s21 }
   0x9   :  { %259 = vmatmul.msk.bf16.vlgmr.msra.gmra.mxu0 %vm51_vm0, %v271_v4  ;;  %v174_v39 = vsel %vm172_vm5, %v28_v37, 0  ;;  %s231_s16 = sshll.u32 %s339_s0, 4  ;;  %s232_s16 = int_to_ptr.vmem [resolvable:$true] %s231_s16 }
   0xa   :  { %268 = vmatmul.msk.bf16.vlgmr.msra.gmra.mxu1 %vm51_vm0, %v69_v5  ;;  %183 = vmatpush.bf16.msra.mxu2 %v174_v39 }
  0x86   :  { %v64_v6 = vpop.f32.mrf.mxu0 }
  0x87   :  { %v98_v7 = vpop.f32.mrf.mxu1 }
  0x88   :  { %v104_v8 = vperm.slane %v98_v7, 0  ;;  %v103_v9 = vrot.slane %v98_v7, 1 }
  0x8a   :  { %v108_v10 = vadd.f32 %v104_v8, %v64_v6  ;;  %v105_v11 = vperm.slane %v103_v9, 0 }
  0x8c   :  { %279 = vtanh.f32 %v108_v10 }
  0x8e   :  { %v66_v12 = vpop.f32.mrf.mxu0 }
  0x8f   :  { %v100_v13 = vpop.f32.mrf.mxu1  ;;  %v109_v15 = vadd.f32 %v105_v11, %v66_v12 }
  0x91   :  { %281 = vtanh.f32 %v109_v15 }
  0x92   :  { %v280_v16 = vpop.eup %279 }
  0x93   :  { %v116_v17 = vmul.f32 %v280_v16, %v278_v14 }
  0x95   :  { %v119_v18 = vsel %vm118_vm1, %v116_v17, 0.0 }
  0x96   :  { %120 = vadd.xlane.f32.xlu0 %v119_v18 }
  0x97   :  { %v282_v19 = vpop.eup %281 }
  0x98   :  { %v117_v20 = vmul.f32 %v282_v19, %v278_v14 }
  0x9a   :  { %v122_v21 = vsel %vm118_vm1, %v117_v20, 0.0 }
  0x9e   :  { %123 = vadd.xlane.f32.xlu0 %v122_v21 }
 0x109   :  { %v121_v22 = vpop.xlane.xlu0 %120 }
 0x10a   :  { %v131_v27 = vperm.slane %v121_v22, %v130_v24 }
 0x111   :  { %v124_v26 = vpop.xlane.xlu0 %123 }
 0x112   :  { %v132_v28 = vperm.slane %v124_v26, %v130_v24 }
 0x114   :  { %v134_v29 = vsel %vm133_vm2, %v132_v28, %v131_v27 }
 0x115   :  { %v136_v30 = vsel %vm126_vm3, -1e+30, %v134_v29 }
 0x116   :  { %v138_v31 = vsel %vm137_vm4, %v136_v30, -inf }
 0x117   :  { %139 = vmax.xlane.f32.xlu1 %v138_v31 }
 0x18a   :  { %v140_v32 = vpop.xlane.xlu1 %139 }
 0x18b   :  { %v141_v33 = vsub.f32 %v136_v30, %v140_v32 }
 0x18d   :  { %v142_v34 = vmul.f32 1.442695, %v141_v33 }
 0x18f   :  { %283 = vpow2.f32 %v142_v34 }
 0x195   :  { %v284_v35 = vpop.eup %283 }
 0x196   :  { %v144_v36 = vsel %vm137_vm4, %v284_v35, 0.0 }
 0x197   :  { %145 = vadd.xlane.f32.xlu1 %v144_v36 }
 0x20a   :  { %v146_v41 = vpop.xlane.xlu1 %145 }
 0x20b   :  { %285 = vrcp.f32 %v146_v41  ;;  %v158_v45 = vand.u32 2147483648, %v146_v41  ;;  %v156_v47 = vand.u32 2147483647, %v146_v41  ;;  %vm152_vm7 = vweird.f32 %v146_v41 }
 0x20d   :  { %v159_v49 = vor.u32 1.1754944e-38, %v158_v45  ;;  %vm157_vm9 = vcmp.eq.f32.partialorder %v156_v47, 8.507059e+37 }
 0x211   :  { %v286_v42 = vpop.eup %285 }
 0x212   :  { %v148_v43 = vmul.f32 %v286_v42, %v146_v41  ;;  %vm153_vm6 = vweird.f32 %v286_v42 }
 0x213   :  { %vm154_vm8 = vmor %vm152_vm7, %vm153_vm6 }
 0x214   :  { %v149_v44 = vsub.f32 1.0, %v148_v43 }
 0x216   :  { %v150_v46 = vmul.f32 %v286_v42, %v149_v44 }
 0x218   :  { %v151_v48 = vadd.f32 %v286_v42, %v150_v46 }
 0x21a   :  { %v155_v50 = vsel %vm154_vm8, %v286_v42, %v151_v48 }
 0x21b   :  { %v160_v51 = vsel %vm157_vm9, %v159_v49, %v155_v50 }
 0x21c   :  { %v161_v52 = vmul.f32 %v284_v35, %v160_v51 }
 0x21e   :  { %v166_v53 = vpack.c.bf16 %v161_v52, %v161_v52  ;;  %162 = vst.msk [vmem:[#allocation4] sm:$0x3] %vm137_vm4, %v161_v52  ;;  %v164_v54 = vrot.slane %v161_v52, 1 }
 0x21f   :  { %236 = dma.vmem_to_hbm [thread:$0]  %s232_s16, 32, %s234_s19, [#allocation5]  }
 0x220   :  { %269 = vmatmul.msk.bf16.vlgmr.msra.gmra.mxu2 %vm168_vm10, %v166_v53  ;;  %v167_v55 = vpack.c.bf16 %v164_v54, %v164_v54 }
 0x222   :  { %270 = vmatmul.msk.bf16.vlgmr.msra.gmra.mxu3 %vm168_vm10, %v167_v55 }
 0x2a3   :  { %v185_v56 = vpop.f32.mrf.mxu2 }
 0x2a5   :  { %v204_v57 = vpop.f32.mrf.mxu3 }
 0x2a6   :  { %v210_v58 = vrot.slane %v204_v57, 7 }
 0x2a8   :  { %v211_v59 = vsel %vm133_vm2, %v210_v58, %v185_v56 }
 0x2a9   :  { %214 = vst.msk [vmem:[#allocation2] sm:$0x3] %vm213_vm11, %v211_v59 }
 0x2aa   :  { %225 = dma.vmem_to_hbm [thread:$0]  %s221_s21, 32, %s223_s24, [#allocation3]  }
 0x2ab   :  { %v187_v60 = vpop.f32.mrf.mxu2 }
 0x2ad   :  { %v206_v61 = vpop.f32.mrf.mxu3 }
 0x2ae   :  { %335 = dma.done.wait [#allocation3], 32  }
 0x2af   :  { %336 = vsyncadd [#allocation3], 4294967264 }
 0x2b0   :  { %337 = dma.done.wait [#allocation5], 32  }
 0x2b1   :  { %338 = vsyncadd [#allocation5], 4294967264 }
 0x2b2   :  { %245 = vsyncpa [#allocation3], 1 }
 0x2b3   :  { %246 = vsyncpa [#allocation5], 1 }

</bundles_post_ra>
